<compile_context>
chip_gen: v7x
topology: tpu7x:2x2x1
jax: 0.10.0
libtpu: 0.0.40
codegen_flags: <defaults>
</compile_context>

<pallas_src>
import functools
import math

import jax
import jax.numpy as jnp
import numpy as np
from jax.experimental import pallas as pl
from jax.experimental.pallas import tpu as pltpu


def _round_up(x, m):
    return (x + m - 1) // m * m


def attention_layer_kernel(q_ref, k_ref, v_ref,
                           wq_ref, bq_ref, wk_ref, bk_ref,
                           wv_ref, bv_ref, wo_ref, bo_ref,
                           o_ref, ctx_scr,
                           *, n_heads, d_keys, d_values, bt, L, S):
    cd = jnp.bfloat16          # MXU operand dtype (f32 accumulation everywhere)
    d_model_in = q_ref.shape[-1]
    m_pad = o_ref.shape[-1]    # lane-dense (padded) output feature dim

    # ---- Q/K/V projections: one big (bt*seq, d_model) matmul each. ----
    # NOTE: keep L, S and bt*L multiples of the sublane packing (8 f32 /
    # 16 bf16) where possible so these reshapes are layout no-ops.
    q_in = q_ref[...].reshape(bt * L, d_model_in).astype(cd)
    k_in = k_ref[...].reshape(bt * S, d_model_in).astype(cd)
    v_in = v_ref[...].reshape(bt * S, d_model_in).astype(cd)

    # 1/sqrt(d_keys) is pre-folded into wq/bq in the wrapper (no VALU pass here).
    q = (jnp.dot(q_in, wq_ref[...], preferred_element_type=jnp.float32)
         + bq_ref[...]).astype(cd)
    k = (jnp.dot(k_in, wk_ref[...], preferred_element_type=jnp.float32)
         + bk_ref[...]).astype(cd)
    v = (jnp.dot(v_in, wv_ref[...], preferred_element_type=jnp.float32)
         + bv_ref[...]).astype(cd)

    q = q.reshape(bt, L, n_heads * d_keys)
    k = k.reshape(bt, S, n_heads * d_keys)
    v = v.reshape(bt, S, n_heads * d_values)

    # ---- Attention per head: static lane slices (no transposes), NT-form
    # contractions batched over the batch-tile dim.  Each head's context is
    # stored into its lane slice of a bf16 scratch buffer so the output
    # projection can run as a single full-K matmul afterwards. ----
    for h in range(n_heads):
        qh = q[:, :, h * d_keys:(h + 1) * d_keys]        # (bt, L, dk)
        kh = k[:, :, h * d_keys:(h + 1) * d_keys]        # (bt, S, dk)
        vh = v[:, :, h * d_values:(h + 1) * d_values]    # (bt, S, dv)

        scores = jnp.einsum('bld,bsd->bls', qh, kh,
                            preferred_element_type=jnp.float32)   # (bt, L, S)

        m = jnp.max(scores, axis=-1, keepdims=True)
        e = jnp.exp(scores - m)                                    # f32 softmax
        denom = jnp.sum(e, axis=-1, keepdims=True)
        attn = e * pl.reciprocal(denom, approx=True)               # EUP slot

        ctx = jnp.einsum('bls,bsd->bld', attn.astype(cd), vh,
                         preferred_element_type=jnp.float32)       # (bt, L, dv)
        ctx_scr[:, h * d_values:(h + 1) * d_values] = (
            ctx.reshape(bt * L, d_values).astype(cd))

    # ---- Output projection: ONE matmul with full contracting dim K = H*dv
    # (keeps the 128/256-deep MXU fed; no per-head accumulator passes). ----
    out = (jnp.dot(ctx_scr[...], wo_ref[...],
                   preferred_element_type=jnp.float32) + bo_ref[...])
    o_ref[...] = out.reshape(bt, L, m_pad).astype(o_ref.dtype)


def _pick_batch_tile(B, L, S, d_model, m_pad, n_heads, d_values,
                     budget_bytes=40 << 20):
    """Largest batch tile that (a) leaves >=2 grid steps when B allows it
    (v7x megacore + auto-pipeline overlap) and (b) keeps the per-step working
    set under a conservative VMEM budget sized for v7x (64 MiB physical)."""
    f32, bf16 = 4, 2

    def working_set(bt):
        dbuf = 2                                                  # auto double-buffering
        act_in = dbuf * (bt * L + 2 * bt * S) * d_model * f32     # q/k/v input tiles
        out_t = dbuf * bt * L * m_pad * f32                       # output tile
        proj = (bt * L + 2 * bt * S) * d_model * bf16             # projected q/k/v
        scores = 2 * bt * L * S * f32                             # scores + exp (1 head live)
        ctx = bt * L * n_heads * d_values * bf16                  # ctx scratch
        acc = bt * L * m_pad * f32                                # out-proj result
        return act_in + out_t + proj + scores + ctx + acc

    divisors = [d for d in range(1, B + 1) if B % d == 0]
    multi_step = [d for d in divisors if B // d >= 2] or divisors
    fitting = [d for d in multi_step if working_set(d) <= budget_bytes]
    return max(fitting) if fitting else min(multi_step)


def attention_layer_forward(queries, keys, values, attn_mask, params, n_heads,
                            *, batch_tile=None):
    # TODO(synk): attn_mask is ignored (inner attention uses mask_flag=False);
    # do not reuse this kernel for the masked/causal configuration.
    del attn_mask
    wq, bq, wk, bk, wv, bv, wo, bo = params
    B, L, d_model = queries.shape
    _, S, _ = keys.shape
    d_keys = wq.shape[1] // n_heads
    d_values = wv.shape[1] // n_heads

    # Softmax scale folded into the query projection (wrapper-side, touches the
    # weights once per call); bf16 MXU operands, biases stay f32.
    scale = 1.0 / math.sqrt(d_keys)
    wq_c = (wq * scale).astype(jnp.bfloat16)
    bq_s = bq * scale
    wk_c = wk.astype(jnp.bfloat16)
    wv_c = wv.astype(jnp.bfloat16)
    wo_c = wo.astype(jnp.bfloat16)

    # Lane-dense output: pad the out-projection feature dim to a multiple of
    # 128 so the kernel's stores are unmasked; wrapper slices back.
    m_pad = _round_up(d_model, 128)
    if m_pad != d_model:
        wo_c = jnp.pad(wo_c, ((0, 0), (0, m_pad - d_model)))
        bo_p = jnp.pad(bo, ((0, 0), (0, m_pad - d_model)))
    else:
        bo_p = bo

    if batch_tile is None:
        bt = _pick_batch_tile(B, L, S, d_model, m_pad, n_heads, d_values)
    else:
        bt = batch_tile
    assert B % bt == 0, "batch_tile must divide B"

    kernel = functools.partial(attention_layer_kernel,
                               n_heads=n_heads, d_keys=d_keys,
                               d_values=d_values, bt=bt, L=L, S=S)

    def full2(a):
        return pl.BlockSpec(a.shape, lambda b: (0, 0))

    out = pl.pallas_call(
        kernel,
        out_shape=jax.ShapeDtypeStruct((B, L, m_pad), jnp.float32),
        grid_spec=pltpu.PrefetchScalarGridSpec(
            num_scalar_prefetch=0,
            grid=(B // bt,),
            in_specs=[
                pl.BlockSpec((bt, L, d_model), lambda b: (b, 0, 0)),  # queries
                pl.BlockSpec((bt, S, d_model), lambda b: (b, 0, 0)),  # keys
                pl.BlockSpec((bt, S, d_model), lambda b: (b, 0, 0)),  # values
                full2(wq_c), full2(bq_s),
                full2(wk_c), full2(bk),
                full2(wv_c), full2(bv),
                full2(wo_c), full2(bo_p),
            ],
            out_specs=pl.BlockSpec((bt, L, m_pad), lambda b: (b, 0, 0)),
            scratch_shapes=[
                pltpu.VMEM((bt * L, n_heads * d_values), jnp.bfloat16)],
        ),
        compiler_params=pltpu.CompilerParams(
            dimension_semantics=("parallel",),
            vmem_limit_bytes=48 << 20),
    )(queries, keys, values, wq_c, bq_s, wk_c, bk, wv_c, bv, wo_c, bo_p)

    if m_pad != d_model:
        # TODO(synk): this slice is an extra HBM pass; skip it when the
        # consumer can read the lane-padded tensor directly.
        out = out[:, :, :d_model]
    return out, None


def reference_forward(queries, keys, values, params, n_heads):
    """Pure-JAX f32 reference mirroring PyTorch AttentionLayer + FullAttention."""
    wq, bq, wk, bk, wv, bv, wo, bo = params
    B, L, _ = queries.shape
    _, S, _ = keys.shape
    H = n_heads
    q = (queries @ wq + bq).reshape(B, L, H, -1)
    k = (keys @ wk + bk).reshape(B, S, H, -1)
    v = (values @ wv + bv).reshape(B, S, H, -1)
    E = q.shape[-1]
    scores = jnp.einsum("blhe,bshe->bhls", q, k) * (1.0 / math.sqrt(E))
    A = jax.nn.softmax(scores, axis=-1)
    out = jnp.einsum("bhls,bshd->blhd", A, v).reshape(B, L, -1)
    return out @ wo + bo


if __name__ == "__main__":
    B, L, S, d_model, n_heads = 2, 8, 8, 32, 4
    d_keys = d_model // n_heads
    d_values = d_model // n_heads

    key = jax.random.PRNGKey(0)
    ks = jax.random.split(key, 11)

    queries = jax.random.normal(ks[0], (B, L, d_model), dtype=jnp.float32)
    keys_in = jax.random.normal(ks[1], (B, S, d_model), dtype=jnp.float32)
    values = jax.random.normal(ks[2], (B, S, d_model), dtype=jnp.float32)

    def lin_init(kw, kb, fan_in, fan_out):
        bound = 1.0 / math.sqrt(fan_in)
        w = jax.random.uniform(kw, (fan_in, fan_out), jnp.float32, -bound, bound)
        b = jax.random.uniform(kb, (1, fan_out), jnp.float32, -bound, bound)
        return w, b

    wq, bq = lin_init(ks[3], ks[4], d_model, d_keys * n_heads)
    wk, bk = lin_init(ks[5], ks[6], d_model, d_keys * n_heads)
    wv, bv = lin_init(ks[7], ks[8], d_model, d_values * n_heads)
    wo, bo = lin_init(ks[9], ks[10], d_values * n_heads, d_model)
    params = (wq, bq, wk, bk, wv, bv, wo, bo)

    out, attn = attention_layer_forward(queries, keys_in, values, None, params, n_heads)
    out = jax.block_until_ready(out)

    ref = reference_forward(queries, keys_in, values, params, n_heads)
    # bf16 MXU operands (f32 accumulation) + approx reciprocal -> bf16-level tolerance.
    np.testing.assert_allclose(np.asarray(out), np.asarray(ref), rtol=3e-2, atol=3e-2)
    assert attn is None

    print("KERNEL_OK")
</pallas_src>

<mosaic_0001>
module attributes {stable_mosaic.version = 11 : i64} {
  func.func @attention_layer_kernel(%arg0: i32, %arg1: memref<1x8x32xf32, #tpu.memory_space<vmem>>, %arg2: memref<1x8x32xf32, #tpu.memory_space<vmem>>, %arg3: memref<1x8x32xf32, #tpu.memory_space<vmem>>, %arg4: memref<32x32xbf16, #tpu.memory_space<vmem>>, %arg5: memref<1x32xf32, #tpu.memory_space<vmem>>, %arg6: memref<32x32xbf16, #tpu.memory_space<vmem>>, %arg7: memref<1x32xf32, #tpu.memory_space<vmem>>, %arg8: memref<32x32xbf16, #tpu.memory_space<vmem>>, %arg9: memref<1x32xf32, #tpu.memory_space<vmem>>, %arg10: memref<32x128xbf16, #tpu.memory_space<vmem>>, %arg11: memref<1x128xf32, #tpu.memory_space<vmem>>, %arg12: memref<1x8x128xf32, #tpu.memory_space<vmem>>, %arg13: memref<8x32xbf16, #tpu.memory_space<vmem>>) attributes {dimension_semantics = [#tpu.dimension_semantics<parallel>], iteration_bounds = array<i64: 2>, scalar_prefetch = 0 : i64, scratch_operands = 1 : i64, tpu.core_type = #tpu.core_type<tc>, window_params = [{transform_indices = @transform_0, window_bounds = array<i64: 1, 8, 32>}, {transform_indices = @transform_1, window_bounds = array<i64: 1, 8, 32>}, {transform_indices = @transform_2, window_bounds = array<i64: 1, 8, 32>}, {pipeline_mode = #tpu.pipeline_mode<synchronous>, transform_indices = @transform_3, window_bounds = array<i64: 32, 32>}, {pipeline_mode = #tpu.pipeline_mode<synchronous>, transform_indices = @transform_4, window_bounds = array<i64: 1, 32>}, {pipeline_mode = #tpu.pipeline_mode<synchronous>, transform_indices = @transform_5, window_bounds = array<i64: 32, 32>}, {pipeline_mode = #tpu.pipeline_mode<synchronous>, transform_indices = @transform_6, window_bounds = array<i64: 1, 32>}, {pipeline_mode = #tpu.pipeline_mode<synchronous>, transform_indices = @transform_7, window_bounds = array<i64: 32, 32>}, {pipeline_mode = #tpu.pipeline_mode<synchronous>, transform_indices = @transform_8, window_bounds = array<i64: 1, 32>}, {pipeline_mode = #tpu.pipeline_mode<synchronous>, transform_indices = @transform_9, window_bounds = array<i64: 32, 128>}, {pipeline_mode = #tpu.pipeline_mode<synchronous>, transform_indices = @transform_10, window_bounds = array<i64: 1, 128>}, {transform_indices = @transform_11, window_bounds = array<i64: 1, 8, 128>}]} {
    %c0 = arith.constant 0 : index
    %c0_0 = arith.constant 0 : index
    %c0_1 = arith.constant 0 : index
    %0 = vector.load %arg1[%c0, %c0_0, %c0_1] : memref<1x8x32xf32, #tpu.memory_space<vmem>>, vector<1x8x32xf32>
    %1 = vector.shape_cast %0 : vector<1x8x32xf32> to vector<8x32xf32>
    %2 = arith.truncf %1 : vector<8x32xf32> to vector<8x32xbf16>
    %c0_2 = arith.constant 0 : index
    %c0_3 = arith.constant 0 : index
    %c0_4 = arith.constant 0 : index
    %3 = vector.load %arg2[%c0_2, %c0_3, %c0_4] : memref<1x8x32xf32, #tpu.memory_space<vmem>>, vector<1x8x32xf32>
    %4 = vector.shape_cast %3 : vector<1x8x32xf32> to vector<8x32xf32>
    %5 = arith.truncf %4 : vector<8x32xf32> to vector<8x32xbf16>
    %c0_5 = arith.constant 0 : index
    %c0_6 = arith.constant 0 : index
    %c0_7 = arith.constant 0 : index
    %6 = vector.load %arg3[%c0_5, %c0_6, %c0_7] : memref<1x8x32xf32, #tpu.memory_space<vmem>>, vector<1x8x32xf32>
    %7 = vector.shape_cast %6 : vector<1x8x32xf32> to vector<8x32xf32>
    %8 = arith.truncf %7 : vector<8x32xf32> to vector<8x32xbf16>
    %c0_8 = arith.constant 0 : index
    %c0_9 = arith.constant 0 : index
    %9 = vector.load %arg4[%c0_8, %c0_9] : memref<32x32xbf16, #tpu.memory_space<vmem>>, vector<32x32xbf16>
    %cst = arith.constant dense<0.000000e+00> : vector<8x32xf32>
    %10 = tpu.matmul %2, %9, %cst {dimension_numbers = #tpu.dot_dimension_numbers<[1], [0], [0], [1], [0, 0, 1, 1], [], []>} : vector<8x32xbf16>, vector<32x32xbf16>, vector<8x32xf32> -> vector<8x32xf32>
    %c0_10 = arith.constant 0 : index
    %c0_11 = arith.constant 0 : index
    %11 = vector.load %arg5[%c0_10, %c0_11] : memref<1x32xf32, #tpu.memory_space<vmem>>, vector<1x32xf32>
    %12 = vector.broadcast %11 : vector<1x32xf32> to vector<8x32xf32>
    %13 = arith.addf %10, %12 : vector<8x32xf32>
    %14 = arith.truncf %13 : vector<8x32xf32> to vector<8x32xbf16>
    %c0_12 = arith.constant 0 : index
    %c0_13 = arith.constant 0 : index
    %15 = vector.load %arg6[%c0_12, %c0_13] : memref<32x32xbf16, #tpu.memory_space<vmem>>, vector<32x32xbf16>
    %cst_14 = arith.constant dense<0.000000e+00> : vector<8x32xf32>
    %16 = tpu.matmul %5, %15, %cst_14 {dimension_numbers = #tpu.dot_dimension_numbers<[1], [0], [0], [1], [0, 0, 1, 1], [], []>} : vector<8x32xbf16>, vector<32x32xbf16>, vector<8x32xf32> -> vector<8x32xf32>
    %c0_15 = arith.constant 0 : index
    %c0_16 = arith.constant 0 : index
    %17 = vector.load %arg7[%c0_15, %c0_16] : memref<1x32xf32, #tpu.memory_space<vmem>>, vector<1x32xf32>
    %18 = vector.broadcast %17 : vector<1x32xf32> to vector<8x32xf32>
    %19 = arith.addf %16, %18 : vector<8x32xf32>
    %20 = arith.truncf %19 : vector<8x32xf32> to vector<8x32xbf16>
    %c0_17 = arith.constant 0 : index
    %c0_18 = arith.constant 0 : index
    %21 = vector.load %arg8[%c0_17, %c0_18] : memref<32x32xbf16, #tpu.memory_space<vmem>>, vector<32x32xbf16>
    %cst_19 = arith.constant dense<0.000000e+00> : vector<8x32xf32>
    %22 = tpu.matmul %8, %21, %cst_19 {dimension_numbers = #tpu.dot_dimension_numbers<[1], [0], [0], [1], [0, 0, 1, 1], [], []>} : vector<8x32xbf16>, vector<32x32xbf16>, vector<8x32xf32> -> vector<8x32xf32>
    %c0_20 = arith.constant 0 : index
    %c0_21 = arith.constant 0 : index
    %23 = vector.load %arg9[%c0_20, %c0_21] : memref<1x32xf32, #tpu.memory_space<vmem>>, vector<1x32xf32>
    %24 = vector.broadcast %23 : vector<1x32xf32> to vector<8x32xf32>
    %25 = arith.addf %22, %24 : vector<8x32xf32>
    %26 = arith.truncf %25 : vector<8x32xf32> to vector<8x32xbf16>
    %27 = vector.shape_cast %14 : vector<8x32xbf16> to vector<1x8x32xbf16>
    %28 = vector.shape_cast %20 : vector<8x32xbf16> to vector<1x8x32xbf16>
    %29 = vector.shape_cast %26 : vector<8x32xbf16> to vector<1x8x32xbf16>
    %30 = vector.extract_strided_slice %27 {offsets = [0, 0, 0], sizes = [1, 8, 8], strides = [1, 1, 1]} : vector<1x8x32xbf16> to vector<1x8x8xbf16>
    %31 = vector.extract_strided_slice %28 {offsets = [0, 0, 0], sizes = [1, 8, 8], strides = [1, 1, 1]} : vector<1x8x32xbf16> to vector<1x8x8xbf16>
    %32 = vector.extract_strided_slice %29 {offsets = [0, 0, 0], sizes = [1, 8, 8], strides = [1, 1, 1]} : vector<1x8x32xbf16> to vector<1x8x8xbf16>
    "tpu.trace_start"() <{level = 10 : i32, message = "bld,bsd->bls"}> : () -> ()
    %cst_22 = arith.constant dense<0.000000e+00> : vector<1x8x8xf32>
    %33 = tpu.matmul %30, %31, %cst_22 {dimension_numbers = #tpu.dot_dimension_numbers<[2], [2], [1], [1], [0, 0, 0, 1, 1, 1], [0], [0]>} : vector<1x8x8xbf16>, vector<1x8x8xbf16>, vector<1x8x8xf32> -> vector<1x8x8xf32>
    "tpu.trace_stop"() : () -> ()
    %cst_23 = arith.constant dense<0xFF800000> : vector<1x8xf32>
    %34 = vector.multi_reduction <maximumf>, %33, %cst_23 [2] : vector<1x8x8xf32> to vector<1x8xf32>
    %35 = vector.shape_cast %34 : vector<1x8xf32> to vector<1x8x1xf32>
    %36 = vector.broadcast %35 : vector<1x8x1xf32> to vector<1x8x8xf32>
    %37 = arith.subf %33, %36 : vector<1x8x8xf32>
    %38 = math.exp %37 : vector<1x8x8xf32>
    %cst_24 = arith.constant dense<0.000000e+00> : vector<1x8xf32>
    %39 = vector.multi_reduction <add>, %38, %cst_24 [2] : vector<1x8x8xf32> to vector<1x8xf32>
    %40 = vector.shape_cast %39 : vector<1x8xf32> to vector<1x8x1xf32>
    %41 = tpu.reciprocal %40 {approx = true} : vector<1x8x1xf32> -> vector<1x8x1xf32>
    %42 = vector.broadcast %41 : vector<1x8x1xf32> to vector<1x8x8xf32>
    %43 = arith.mulf %38, %42 : vector<1x8x8xf32>
    %44 = arith.truncf %43 : vector<1x8x8xf32> to vector<1x8x8xbf16>
    "tpu.trace_start"() <{level = 10 : i32, message = "bls,bsd->bld"}> : () -> ()
    %cst_25 = arith.constant dense<0.000000e+00> : vector<1x8x8xf32>
    %45 = tpu.matmul %44, %32, %cst_25 {dimension_numbers = #tpu.dot_dimension_numbers<[2], [1], [1], [2], [0, 0, 0, 1, 1, 2], [0], [0]>} : vector<1x8x8xbf16>, vector<1x8x8xbf16>, vector<1x8x8xf32> -> vector<1x8x8xf32>
    "tpu.trace_stop"() : () -> ()
    %46 = vector.shape_cast %45 : vector<1x8x8xf32> to vector<8x8xf32>
    %47 = arith.truncf %46 : vector<8x8xf32> to vector<8x8xbf16>
    %c0_26 = arith.constant 0 : index
    %c0_27 = arith.constant 0 : index
    %48 = vector.load %arg13[%c0_26, %c0_27] : memref<8x32xbf16, #tpu.memory_space<vmem>>, vector<8x8xbf16>
    tpu.vector_store %arg13[%c0_26, %c0_27], %47 {strides = array<i32>} : memref<8x32xbf16, #tpu.memory_space<vmem>>, vector<8x8xbf16>,
    %49 = vector.extract_strided_slice %27 {offsets = [0, 0, 8], sizes = [1, 8, 8], strides = [1, 1, 1]} : vector<1x8x32xbf16> to vector<1x8x8xbf16>
    %50 = vector.extract_strided_slice %28 {offsets = [0, 0, 8], sizes = [1, 8, 8], strides = [1, 1, 1]} : vector<1x8x32xbf16> to vector<1x8x8xbf16>
    %51 = vector.extract_strided_slice %29 {offsets = [0, 0, 8], sizes = [1, 8, 8], strides = [1, 1, 1]} : vector<1x8x32xbf16> to vector<1x8x8xbf16>
    "tpu.trace_start"() <{level = 10 : i32, message = "bld,bsd->bls"}> : () -> ()
    %cst_28 = arith.constant dense<0.000000e+00> : vector<1x8x8xf32>
    %52 = tpu.matmul %49, %50, %cst_28 {dimension_numbers = #tpu.dot_dimension_numbers<[2], [2], [1], [1], [0, 0, 0, 1, 1, 1], [0], [0]>} : vector<1x8x8xbf16>, vector<1x8x8xbf16>, vector<1x8x8xf32> -> vector<1x8x8xf32>
    "tpu.trace_stop"() : () -> ()
    %cst_29 = arith.constant dense<0xFF800000> : vector<1x8xf32>
    %53 = vector.multi_reduction <maximumf>, %52, %cst_29 [2] : vector<1x8x8xf32> to vector<1x8xf32>
    %54 = vector.shape_cast %53 : vector<1x8xf32> to vector<1x8x1xf32>
    %55 = vector.broadcast %54 : vector<1x8x1xf32> to vector<1x8x8xf32>
    %56 = arith.subf %52, %55 : vector<1x8x8xf32>
    %57 = math.exp %56 : vector<1x8x8xf32>
    %cst_30 = arith.constant dense<0.000000e+00> : vector<1x8xf32>
    %58 = vector.multi_reduction <add>, %57, %cst_30 [2] : vector<1x8x8xf32> to vector<1x8xf32>
    %59 = vector.shape_cast %58 : vector<1x8xf32> to vector<1x8x1xf32>
    %60 = tpu.reciprocal %59 {approx = true} : vector<1x8x1xf32> -> vector<1x8x1xf32>
    %61 = vector.broadcast %60 : vector<1x8x1xf32> to vector<1x8x8xf32>
    %62 = arith.mulf %57, %61 : vector<1x8x8xf32>
    %63 = arith.truncf %62 : vector<1x8x8xf32> to vector<1x8x8xbf16>
    "tpu.trace_start"() <{level = 10 : i32, message = "bls,bsd->bld"}> : () -> ()
    %cst_31 = arith.constant dense<0.000000e+00> : vector<1x8x8xf32>
    %64 = tpu.matmul %63, %51, %cst_31 {dimension_numbers = #tpu.dot_dimension_numbers<[2], [1], [1], [2], [0, 0, 0, 1, 1, 2], [0], [0]>} : vector<1x8x8xbf16>, vector<1x8x8xbf16>, vector<1x8x8xf32> -> vector<1x8x8xf32>
    "tpu.trace_stop"() : () -> ()
    %65 = vector.shape_cast %64 : vector<1x8x8xf32> to vector<8x8xf32>
    %66 = arith.truncf %65 : vector<8x8xf32> to vector<8x8xbf16>
    %c0_32 = arith.constant 0 : index
    %c8 = arith.constant 8 : index
    %67 = vector.load %arg13[%c0_32, %c8] : memref<8x32xbf16, #tpu.memory_space<vmem>>, vector<8x8xbf16>
    tpu.vector_store %arg13[%c0_32, %c8], %66 {strides = array<i32>} : memref<8x32xbf16, #tpu.memory_space<vmem>>, vector<8x8xbf16>,
    %68 = vector.extract_strided_slice %27 {offsets = [0, 0, 16], sizes = [1, 8, 8], strides = [1, 1, 1]} : vector<1x8x32xbf16> to vector<1x8x8xbf16>
    %69 = vector.extract_strided_slice %28 {offsets = [0, 0, 16], sizes = [1, 8, 8], strides = [1, 1, 1]} : vector<1x8x32xbf16> to vector<1x8x8xbf16>
    %70 = vector.extract_strided_slice %29 {offsets = [0, 0, 16], sizes = [1, 8, 8], strides = [1, 1, 1]} : vector<1x8x32xbf16> to vector<1x8x8xbf16>
    "tpu.trace_start"() <{level = 10 : i32, message = "bld,bsd->bls"}> : () -> ()
    %cst_33 = arith.constant dense<0.000000e+00> : vector<1x8x8xf32>
    %71 = tpu.matmul %68, %69, %cst_33 {dimension_numbers = #tpu.dot_dimension_numbers<[2], [2], [1], [1], [0, 0, 0, 1, 1, 1], [0], [0]>} : vector<1x8x8xbf16>, vector<1x8x8xbf16>, vector<1x8x8xf32> -> vector<1x8x8xf32>
    "tpu.trace_stop"() : () -> ()
    %cst_34 = arith.constant dense<0xFF800000> : vector<1x8xf32>
    %72 = vector.multi_reduction <maximumf>, %71, %cst_34 [2] : vector<1x8x8xf32> to vector<1x8xf32>
    %73 = vector.shape_cast %72 : vector<1x8xf32> to vector<1x8x1xf32>
    %74 = vector.broadcast %73 : vector<1x8x1xf32> to vector<1x8x8xf32>
    %75 = arith.subf %71, %74 : vector<1x8x8xf32>
    %76 = math.exp %75 : vector<1x8x8xf32>
    %cst_35 = arith.constant dense<0.000000e+00> : vector<1x8xf32>
    %77 = vector.multi_reduction <add>, %76, %cst_35 [2] : vector<1x8x8xf32> to vector<1x8xf32>
    %78 = vector.shape_cast %77 : vector<1x8xf32> to vector<1x8x1xf32>
    %79 = tpu.reciprocal %78 {approx = true} : vector<1x8x1xf32> -> vector<1x8x1xf32>
    %80 = vector.broadcast %79 : vector<1x8x1xf32> to vector<1x8x8xf32>
    %81 = arith.mulf %76, %80 : vector<1x8x8xf32>
    %82 = arith.truncf %81 : vector<1x8x8xf32> to vector<1x8x8xbf16>
    "tpu.trace_start"() <{level = 10 : i32, message = "bls,bsd->bld"}> : () -> ()
    %cst_36 = arith.constant dense<0.000000e+00> : vector<1x8x8xf32>
    %83 = tpu.matmul %82, %70, %cst_36 {dimension_numbers = #tpu.dot_dimension_numbers<[2], [1], [1], [2], [0, 0, 0, 1, 1, 2], [0], [0]>} : vector<1x8x8xbf16>, vector<1x8x8xbf16>, vector<1x8x8xf32> -> vector<1x8x8xf32>
    "tpu.trace_stop"() : () -> ()
    %84 = vector.shape_cast %83 : vector<1x8x8xf32> to vector<8x8xf32>
    %85 = arith.truncf %84 : vector<8x8xf32> to vector<8x8xbf16>
    %c0_37 = arith.constant 0 : index
    %c16 = arith.constant 16 : index
    %86 = vector.load %arg13[%c0_37, %c16] : memref<8x32xbf16, #tpu.memory_space<vmem>>, vector<8x8xbf16>
    tpu.vector_store %arg13[%c0_37, %c16], %85 {strides = array<i32>} : memref<8x32xbf16, #tpu.memory_space<vmem>>, vector<8x8xbf16>,
    %87 = vector.extract_strided_slice %27 {offsets = [0, 0, 24], sizes = [1, 8, 8], strides = [1, 1, 1]} : vector<1x8x32xbf16> to vector<1x8x8xbf16>
    %88 = vector.extract_strided_slice %28 {offsets = [0, 0, 24], sizes = [1, 8, 8], strides = [1, 1, 1]} : vector<1x8x32xbf16> to vector<1x8x8xbf16>
    %89 = vector.extract_strided_slice %29 {offsets = [0, 0, 24], sizes = [1, 8, 8], strides = [1, 1, 1]} : vector<1x8x32xbf16> to vector<1x8x8xbf16>
    "tpu.trace_start"() <{level = 10 : i32, message = "bld,bsd->bls"}> : () -> ()
    %cst_38 = arith.constant dense<0.000000e+00> : vector<1x8x8xf32>
    %90 = tpu.matmul %87, %88, %cst_38 {dimension_numbers = #tpu.dot_dimension_numbers<[2], [2], [1], [1], [0, 0, 0, 1, 1, 1], [0], [0]>} : vector<1x8x8xbf16>, vector<1x8x8xbf16>, vector<1x8x8xf32> -> vector<1x8x8xf32>
    "tpu.trace_stop"() : () -> ()
    %cst_39 = arith.constant dense<0xFF800000> : vector<1x8xf32>
    %91 = vector.multi_reduction <maximumf>, %90, %cst_39 [2] : vector<1x8x8xf32> to vector<1x8xf32>
    %92 = vector.shape_cast %91 : vector<1x8xf32> to vector<1x8x1xf32>
    %93 = vector.broadcast %92 : vector<1x8x1xf32> to vector<1x8x8xf32>
    %94 = arith.subf %90, %93 : vector<1x8x8xf32>
    %95 = math.exp %94 : vector<1x8x8xf32>
    %cst_40 = arith.constant dense<0.000000e+00> : vector<1x8xf32>
    %96 = vector.multi_reduction <add>, %95, %cst_40 [2] : vector<1x8x8xf32> to vector<1x8xf32>
    %97 = vector.shape_cast %96 : vector<1x8xf32> to vector<1x8x1xf32>
    %98 = tpu.reciprocal %97 {approx = true} : vector<1x8x1xf32> -> vector<1x8x1xf32>
    %99 = vector.broadcast %98 : vector<1x8x1xf32> to vector<1x8x8xf32>
    %100 = arith.mulf %95, %99 : vector<1x8x8xf32>
    %101 = arith.truncf %100 : vector<1x8x8xf32> to vector<1x8x8xbf16>
    "tpu.trace_start"() <{level = 10 : i32, message = "bls,bsd->bld"}> : () -> ()
    %cst_41 = arith.constant dense<0.000000e+00> : vector<1x8x8xf32>
    %102 = tpu.matmul %101, %89, %cst_41 {dimension_numbers = #tpu.dot_dimension_numbers<[2], [1], [1], [2], [0, 0, 0, 1, 1, 2], [0], [0]>} : vector<1x8x8xbf16>, vector<1x8x8xbf16>, vector<1x8x8xf32> -> vector<1x8x8xf32>
    "tpu.trace_stop"() : () -> ()
    %103 = vector.shape_cast %102 : vector<1x8x8xf32> to vector<8x8xf32>
    %104 = arith.truncf %103 : vector<8x8xf32> to vector<8x8xbf16>
    %c0_42 = arith.constant 0 : index
    %c24 = arith.constant 24 : index
    %105 = vector.load %arg13[%c0_42, %c24] : memref<8x32xbf16, #tpu.memory_space<vmem>>, vector<8x8xbf16>
    tpu.vector_store %arg13[%c0_42, %c24], %104 {strides = array<i32>} : memref<8x32xbf16, #tpu.memory_space<vmem>>, vector<8x8xbf16>,
    %c0_43 = arith.constant 0 : index
    %c0_44 = arith.constant 0 : index
    %106 = vector.load %arg13[%c0_43, %c0_44] : memref<8x32xbf16, #tpu.memory_space<vmem>>, vector<8x32xbf16>
    %c0_45 = arith.constant 0 : index
    %c0_46 = arith.constant 0 : index
    %107 = vector.load %arg10[%c0_45, %c0_46] : memref<32x128xbf16, #tpu.memory_space<vmem>>, vector<32x128xbf16>
    %cst_47 = arith.constant dense<0.000000e+00> : vector<8x128xf32>
    %108 = tpu.matmul %106, %107, %cst_47 {dimension_numbers = #tpu.dot_dimension_numbers<[1], [0], [0], [1], [0, 0, 1, 1], [], []>} : vector<8x32xbf16>, vector<32x128xbf16>, vector<8x128xf32> -> vector<8x128xf32>
    %c0_48 = arith.constant 0 : index
    %c0_49 = arith.constant 0 : index
    %109 = vector.load %arg11[%c0_48, %c0_49] : memref<1x128xf32, #tpu.memory_space<vmem>>, vector<1x128xf32>
    %110 = vector.broadcast %109 : vector<1x128xf32> to vector<8x128xf32>
    %111 = arith.addf %108, %110 : vector<8x128xf32>
    %112 = vector.shape_cast %111 : vector<8x128xf32> to vector<1x8x128xf32>
    %c0_50 = arith.constant 0 : index
    %c0_51 = arith.constant 0 : index
    %c0_52 = arith.constant 0 : index
    %113 = vector.load %arg12[%c0_50, %c0_51, %c0_52] : memref<1x8x128xf32, #tpu.memory_space<vmem>>, vector<1x8x128xf32>
    tpu.vector_store %arg12[%c0_50, %c0_51, %c0_52], %112 {strides = array<i32>} : memref<1x8x128xf32, #tpu.memory_space<vmem>>, vector<1x8x128xf32>,
    return
  }
  func.func @transform_0(%arg0: i32) -> (i32, i32, i32) {
    %c0_i32 = arith.constant 0 : i32
    %c0_i32_0 = arith.constant 0 : i32
    %c0_i32_1 = arith.constant 0 : i32
    return %arg0, %c0_i32, %c0_i32_0 : i32, i32, i32
  }
  func.func @transform_1(%arg0: i32) -> (i32, i32, i32) {
    %c0_i32 = arith.constant 0 : i32
    %c0_i32_0 = arith.constant 0 : i32
    %c0_i32_1 = arith.constant 0 : i32
    return %arg0, %c0_i32, %c0_i32_0 : i32, i32, i32
  }
  func.func @transform_2(%arg0: i32) -> (i32, i32, i32) {
    %c0_i32 = arith.constant 0 : i32
    %c0_i32_0 = arith.constant 0 : i32
    %c0_i32_1 = arith.constant 0 : i32
    return %arg0, %c0_i32, %c0_i32_0 : i32, i32, i32
  }
  func.func @transform_3(%arg0: i32) -> (i32, i32) {
    %c0_i32 = arith.constant 0 : i32
    %c0_i32_0 = arith.constant 0 : i32
    %c0_i32_1 = arith.constant 0 : i32
    return %c0_i32, %c0_i32_0 : i32, i32
  }
  func.func @transform_4(%arg0: i32) -> (i32, i32) {
    %c0_i32 = arith.constant 0 : i32
    %c0_i32_0 = arith.constant 0 : i32
    %c0_i32_1 = arith.constant 0 : i32
    return %c0_i32, %c0_i32_0 : i32, i32
  }
  func.func @transform_5(%arg0: i32) -> (i32, i32) {
    %c0_i32 = arith.constant 0 : i32
    %c0_i32_0 = arith.constant 0 : i32
    %c0_i32_1 = arith.constant 0 : i32
    return %c0_i32, %c0_i32_0 : i32, i32
  }
  func.func @transform_6(%arg0: i32) -> (i32, i32) {
    %c0_i32 = arith.constant 0 : i32
    %c0_i32_0 = arith.constant 0 : i32
    %c0_i32_1 = arith.constant 0 : i32
    return %c0_i32, %c0_i32_0 : i32, i32
  }
  func.func @transform_7(%arg0: i32) -> (i32, i32) {
    %c0_i32 = arith.constant 0 : i32
    %c0_i32_0 = arith.constant 0 : i32
    %c0_i32_1 = arith.constant 0 : i32
    return %c0_i32, %c0_i32_0 : i32, i32
  }
  func.func @transform_8(%arg0: i32) -> (i32, i32) {
    %c0_i32 = arith.constant 0 : i32
    %c0_i32_0 = arith.constant 0 : i32
    %c0_i32_1 = arith.constant 0 : i32
    return %c0_i32, %c0_i32_0 : i32, i32
  }
  func.func @transform_9(%arg0: i32) -> (i32, i32) {
    %c0_i32 = arith.constant 0 : i32
    %c0_i32_0 = arith.constant 0 : i32
    %c0_i32_1 = arith.constant 0 : i32
    return %c0_i32, %c0_i32_0 : i32, i32
  }
  func.func @transform_10(%arg0: i32) -> (i32, i32) {
    %c0_i32 = arith.constant 0 : i32
    %c0_i32_0 = arith.constant 0 : i32
    %c0_i32_1 = arith.constant 0 : i32
    return %c0_i32, %c0_i32_0 : i32, i32
  }
  func.func @transform_11(%arg0: i32) -> (i32, i32, i32) {
    %c0_i32 = arith.constant 0 : i32
    %c0_i32_0 = arith.constant 0 : i32
    %c0_i32_1 = arith.constant 0 : i32
    return %arg0, %c0_i32, %c0_i32_0 : i32, i32, i32
  }
}

</mosaic_0001>

<bundles_post_ra>
// kernel: tpu_custom_call.1
= control target key start
LH: loop header
LB: loop body
LE: loop exit
PB: predicated region body
PF: predicated region fallthrough
CT: control target
= control target key end

     0   :  { %s2463_s0 = inlined_call_operand.hbm [shape: f32[2,8,32], index: 0, kind: input, shape index: {}]   ;;  %s2464_s1 = inlined_call_operand.hbm [shape: f32[2,8,32], index: 1, kind: input, shape index: {}]   ;;  %s2465_s2 = inlined_call_operand.hbm [shape: f32[2,8,32], index: 2, kind: input, shape index: {}]   ;;  %s2466_s3 = inlined_call_operand.hbm [shape: bf16[32,32], index: 3, kind: input, shape index: {}]   ;;  %s2467_s4 = inlined_call_operand.vmem [shape: f32[1,32], index: 4, kind: input, shape index: {}]   ;;  %s2468_s5 = inlined_call_operand.vmem [shape: bf16[32,32], index: 5, kind: input, shape index: {}]   ;;  %s2469_s6 = inlined_call_operand.vmem [shape: f32[1,32], index: 6, kind: input, shape index: {}]   ;;  %s2470_s7 = inlined_call_operand.hbm [shape: bf16[32,32], index: 7, kind: input, shape index: {}]   ;;  %s2471_s8 = inlined_call_operand.hbm [shape: f32[1,32], index: 8, kind: input, shape index: {}]   ;;  %s2472_s9 = inlined_call_operand.vmem [shape: bf16[32,128], index: 9, kind: input, shape index: {}]   ;;  %s2473_s10 = inlined_call_operand.vmem [shape: f32[1,128], index: 10, kind: input, shape index: {}]   ;;  %s2474_s11 = inlined_call_operand.hbm [shape: f32[2,8,128], index: 11, kind: output, shape index: {}]  }
   0x1   :  { %2499 = sst [smem:[#allocation26_spill]] %s2464_s1 }
   0x2   :  { %2500 = sst [smem:[#allocation27_spill]] %s2466_s3 }
   0x3   :  { %2501 = sst [smem:[#allocation28_spill]] %s2467_s4 }
   0x4   :  { %2502 = sst [smem:[#allocation29_spill]] %s2472_s9 }
   0x5   :  { %2503 = sst [smem:[#allocation30_spill]] %s2473_s10 }
   0x6   :  { %2504 = sst [smem:[#allocation31_spill]] %s2474_s11 }
   0x7   :  { %16 = vsyncpa [#allocation4], 0 }
   0x8   :  { %18 = vsyncpa [#allocation4 + $0x1], 0 }
   0x9   :  { %19 = vsyncpa [#allocation7], 0 }
   0xa   :  { %21 = vsyncpa [#allocation7 + $0x1], 0 }
   0xb   :  { %22 = vsyncpa [#allocation10], 0 }
   0xc   :  { %23 = vsyncpa [#allocation13], 0 }
   0xd   :  { %24 = vsyncpa [#allocation5], 0 }
   0xe   :  { %26 = vsyncpa [#allocation5 + $0x1], 0  ;;  %s2031_s17 = smov 0   ;;  %s2033_s18 = smov 0  }
   0xf   :  { %s2035_s19 = smov 0   ;;  %s2037_s20 = smov 0  }
  0x10 LB: > { %2505 = sst [smem:[#allocation20_spill]] %s1940_s17  ;;  %s2052_s21 = sadd.s32 4294967295, %s1952_s20   ;;  %s1952_s20 = sphi %s2037_s20, %s2547_s20   ;;  %s1948_s19 = sphi %s2035_s19, %s2551_s19   ;;  %s1944_s18 = sphi %s2033_s18, %s2550_s18   ;;  %s1940_s17 = sphi %s2031_s17, %s2549_s17  }
  0x11   : > { %2506 = sst [smem:[#allocation21_spill]] %s1952_s20  ;;  %s1417_s22 = sadd.s32 4294967294, %s1952_s20  }
  0x12   : > { %p52_p0 = scmp.ne.s32.totalorder %s1944_s18, %s1940_s17  ;;  %p2477_p1 = scmp.eq.s32.totalorder %s2052_s21, 0 }
  0x13   : > { %p302_p3 = scmp.eq.s32.totalorder %s1417_s22, 1  ;;  %p1418_p5 = scmp.ge.s32.totalorder %s1952_s20, 1 }
  0x14   : > { %p2061_p4 = por %p2477_p1, %p52_p0  ;;  %p309_p7 = scmp.lt.s32.totalorder %s1952_s20, 3 }
  0x15   : > { %p2066_p6 = por %p302_p3, %p52_p0  ;;  %s1954_s26 = smov [#allocation9]  }
  0x16   : > { %s2507_s23 = scalar_select %p2061_p4, 1, 0 }
  0x17   : > { %s2508_s24 = scalar_select %p2066_p6, 1, 0 }
  0x18   : > { %p2071_p8 = pnand %p1418_p5, %p309_p7  ;;  %s321_s27 = sshll.u32 %s1954_s26, 4  ;;  %s2075_s27 = int_to_ptr.vmem [resolvable:$true] %s321_s27 }
  0x19   : > { %2509 = sst [smem:[#allocation22_spill]] %s2508_s24  ;;  %s2087_s29 = sadd.s32 1, %s1952_s20  }
  0x1a   : > { %s2510_s25 = scalar_select %p2071_p8, 1, 0 }
  0x1b   : > { %p1599_p9 = pneg %p2071_p8  ;;  %2512 = sst [smem:[#allocation23_spill]] %s2087_s29 }
  0x1c   : > { %s39_s30 = sadd.s32 1, %s1948_s19  ;;  %s36_s12 = ssub.s32 %s1952_s20, %s2087_s29 }
  0x1d   : > { %p2082_p11 = pnand %p1599_p9, %p2477_p1  ;;  %s2513_s3 = sld [smem:[#allocation27_spill]] }
  0x1f   : > { %s2511_s28 = scalar_select %p2082_p11, 1, 0 }
  0x20   : > { %p2100_p13 = pneg %p2082_p11 }
  0x22   : > { %s2514_s26 = scalar_select %p2100_p13, 1, 0 }
  0x23   : > { %s1700_s15 = scalar_lea.hbm %s2513_s3, 256 }
  0x24   : > { %p1701_p12 = scmp.ne.s32.totalorder %s2513_s3, %s1700_s15  ;;  %p1707_p5 = scmp.lt.u32.totalorder %s1700_s15, %s2513_s3 }
  0x26   : > { %p1703_p0 = pnand %p2100_p13, %p1701_p12 }
  0x28   : > { %p1704_p3 = pneg %p1703_p0 }
  0x2a   : > { %p1709_p7 = pnand %p1707_p5, %p1704_p3 }
  0x2c   : > { %1712 = shalt.err (!%p1709_p7)
}
  0x2d   : > { %s1713_s13 = scalar_lea.vmem %s2075_s27, 256  ;;  %p1721_p2 = scmp.lt.s32.totalorder %s2075_s27, %s2075_s27 }
  0x2e   : > { %p1714_p9 = scmp.ne.s32.totalorder %s2075_s27, %s1713_s13  ;;  %p1722_p6 = scmp.lt.s32.totalorder %s1713_s13, %s1713_s13 }
  0x30   : > { %p1716_p10 = pnand %p1714_p9, %p2100_p13  ;;  %p1723_p12 = por %p1722_p6, %p1721_p2 }
  0x32   : > { %p1717_p1 = pneg %p1716_p10 }
  0x34   : > { %p1724_p0 = pnand %p1723_p12, %p1717_p1 }
  0x36   : > { %1727 = shalt.err (!%p1724_p0)
}
  0x37   : > { %s2481_s14 = smov 64   ;;  %s2482_s17 = smov 4  }
  0x38   : > { %1602 = dma.hbm_to_vmem [thread:$0]  (!%p2082_p11), %s2513_s3, 256, %s2075_s27, [#allocation10], %s2481_s14, %s2481_s14, %s2482_s17  }
  0x39   : > { %p37_p1 = scmp.eq.s32.totalorder %s36_s12, 0  ;;  %p46_p2 = scmp.ne.s32.totalorder %s1948_s19, %s1944_s18 }
  0x3a   : > { %p47_p6 = scmp.eq.s32.totalorder %s1952_s20, 0  ;;  %p1626_p10 = scmp.lt.s32.totalorder %s1952_s20, 2 }
  0x3b   : > { %s2129_s16 = scalar_select %p37_p1, %s1948_s19, %s39_s30  }
  0x3c   : > { %p48_p3 = por %p47_p6, %p46_p2  ;;  %p2516_p5 = scmp.eq.s32.totalorder %s2052_s21, 1 }
  0x3d   : > { %2515 = sst [smem:[#allocation24_spill]] %s2129_s16  ;;  %s2483_s13 = sand.u32 1, %s1948_s19  }
  0x3e   : > { %p2133_p7 = por %p2516_p5, %p46_p2  ;;  %s2139_s29 = sshll.u32 %s1952_s20, 7 }
  0x3f   : > { %s2143_s11 = sshll.u32 %s2483_s13, 3  ;;  %p2145_p9 = pnand %p1626_p10, %p48_p3 }
  0x40   : > { %s2517_s22 = scalar_select %p2133_p7, 1, 0 }
  0x41   : > { %s2519_s27 = scalar_select %p2145_p9, 1, 0 }
  0x42   : > { %2518 = sst [smem:[#allocation25_spill]] %s2517_s22  ;;  %s392_s30 = sand.u32 1, %s1952_s20  }
  0x43   : > { %s2520_s1 = sld [smem:[#allocation26_spill]]  ;;  %s396_s14 = scalar_lea.vmem [#allocation6], %s2143_s11 }
  0x44   : > { %s403_s17 = sshll.u32 %s396_s14, 4  ;;  %s2159_s13 = scalar_lea.sflag [#allocation7], %s392_s30  ;;  %s2157_s17 = int_to_ptr.vmem [resolvable:$true] %s403_s17 }
  0x45   : > { %p2165_p0 = pneg %p2145_p9 }
  0x47   : > { %s2521_s16 = scalar_select %p2165_p0, 1, 0 }
  0x49   : > { %s2154_s15 = scalar_lea.hbm %s2520_s1, %s2139_s29  ;;  %s1733_s20 = scalar_lea.hbm %s2520_s1, 256 }
  0x4a   : > { %s1728_s3 = scalar_lea.hbm %s2154_s15, 128  ;;  %p1734_p6 = scmp.lt.u32.totalorder %s2154_s15, %s2520_s1 }
  0x4b   : > { %p1729_p12 = scmp.ne.s32.totalorder %s2154_s15, %s1728_s3  ;;  %p1735_p10 = scmp.lt.u32.totalorder %s1733_s20, %s1728_s3 }
  0x4c   : > { %p1737_p5 = scmp.lt.u32.totalorder %s1728_s3, %s2154_s15 }
  0x4d   : > { %p1731_p1 = pnand %p2165_p0, %p1729_p12  ;;  %p1736_p3 = por %p1735_p10, %p1734_p6 }
  0x4f   : > { %p1732_p2 = pneg %p1731_p1  ;;  %p1738_p7 = por %p1737_p5, %p1736_p3 }
  0x51   : > { %p1739_p4 = pnand %p1738_p7, %p1732_p2 }
  0x53   : > { %1742 = shalt.err (!%p1739_p4)
}
  0x54   : > { %s1743_s30 = scalar_lea.vmem %s2157_s17, 128  ;;  %s1957_s12 = smov [#allocation6]  }
  0x55   : > { %p1744_p12 = scmp.ne.s32.totalorder %s2157_s17, %s1743_s30  ;;  %s1748_s24 = sshll.u32 %s1957_s12, 4  ;;  %s1749_s24 = int_to_ptr.vmem [resolvable:$false] %s1748_s24 }
  0x56   : > { %s1750_s22 = scalar_lea.vmem %s1749_s24, 256  ;;  %p1751_p11 = scmp.lt.s32.totalorder %s2157_s17, %s1749_s24 }
  0x57   : > { %p1746_p1 = pnand %p1744_p12, %p2165_p0  ;;  %p1752_p13 = scmp.lt.s32.totalorder %s1750_s22, %s1743_s30 }
  0x59   : > { %p1747_p8 = pneg %p1746_p1  ;;  %p1753_p6 = por %p1752_p13, %p1751_p11 }
  0x5b   : > { %p1754_p10 = pnand %p1753_p6, %p1747_p8 }
  0x5d   : > { %1757 = shalt.err (!%p1754_p10)
}
  0x5e   : > { %1615 = dma.hbm_to_vmem [thread:$0]  (!%p2145_p9), %s2154_s15, 128, %s2157_s17, %s2159_s13  }
  0x5f   : > { %s1958_s3 = smov [#allocation11]   ;;  %s1959_s14 = smov [#allocation12]  }
  0x60   : > { %s343_s20 = sshll.u32 %s1958_s3, 4  ;;  %s357_s1 = sshll.u32 %s1959_s14, 4  ;;  %s344_s20 = int_to_ptr.vmem [resolvable:$true] %s343_s20  ;;  %s358_s1 = int_to_ptr.vmem [resolvable:$true] %s357_s1 }
  0x61   : > { %s1758_s24 = scalar_lea.hbm %s2470_s7, 256  ;;  %p2522_p8 = scmp.ne.s32.totalorder %s2514_s26, 0 }
  0x62   : > { %p1759_p4 = scmp.ne.s32.totalorder %s2470_s7, %s1758_s24  ;;  %p1765_p7 = scmp.lt.u32.totalorder %s1758_s24, %s2470_s7 }
  0x64   : > { %p1761_p11 = pnand %p1759_p4, %p2522_p8 }
  0x66   : > { %p1762_p13 = pneg %p1761_p11 }
  0x68   : > { %p1767_p2 = pnand %p1765_p7, %p1762_p13 }
  0x6a   : > { %1770 = shalt.err (!%p1767_p2)
}
  0x6b   : > { %s1771_s17 = scalar_lea.vmem %s344_s20, 256  ;;  %p1779_p1 = scmp.lt.s32.totalorder %s344_s20, %s344_s20 }
  0x6c   : > { %p1772_p3 = scmp.ne.s32.totalorder %s344_s20, %s1771_s17  ;;  %p1780_p6 = scmp.lt.s32.totalorder %s1771_s17, %s1771_s17 }
  0x6e   : > { %p1774_p5 = pnand %p1772_p3, %p2522_p8  ;;  %p1781_p10 = por %p1780_p6, %p1779_p1 }
  0x70   : > { %p1775_p12 = pneg %p1774_p5 }
  0x72   : > { %p1782_p9 = pnand %p1781_p10, %p1775_p12 }
  0x74   : > { %1785 = shalt.err (!%p1782_p9)
}
  0x75   : > { %p2523_p4 = scmp.ne.s32.totalorder %s2511_s28, 0  ;;  %s2524_s10 = smov 4  }
  0x76   : > { %s2525_s15 = smov 64   ;;  %s1786_s12 = scalar_lea.hbm %s2471_s8, 16 }
  0x77   : > { %1605 = dma.hbm_to_vmem [thread:$0]  (!%p2523_p4), %s2470_s7, 256, %s344_s20, [#allocation10], %s2525_s15, %s2525_s15, %s2524_s10  }
  0x78   : > { %p1787_p11 = scmp.ne.s32.totalorder %s2471_s8, %s1786_s12  ;;  %p1793_p7 = scmp.lt.u32.totalorder %s1786_s12, %s2471_s8 }
  0x7a   : > { %p1789_p9 = pnand %p1787_p11, %p2522_p8 }
  0x7c   : > { %p1790_p13 = pneg %p1789_p9 }
  0x7e   : > { %p1795_p2 = pnand %p1793_p7, %p1790_p13 }
  0x80   : > { %1798 = shalt.err (!%p1795_p2)
}
  0x81   : > { %s1799_s4 = scalar_lea.vmem %s358_s1, 16  ;;  %s1806_s20 = scalar_lea.vmem %s358_s1, 32 }
  0x82   : > { %p1800_p3 = scmp.ne.s32.totalorder %s358_s1, %s1799_s4  ;;  %p1807_p1 = scmp.lt.s32.totalorder %s358_s1, %s358_s1 }
  0x83   : > { %p1808_p6 = scmp.lt.s32.totalorder %s1806_s20, %s1799_s4 }
  0x84   : > { %p1802_p5 = pnand %p1800_p3, %p2522_p8 }
  0x85   : > { %p1809_p10 = por %p1808_p6, %p1807_p1 }
  0x86   : > { %p1803_p12 = pneg %p1802_p5 }
  0x88   : > { %p1810_p0 = pnand %p1809_p10, %p1803_p12 }
  0x8a   : > { %1813 = shalt.err (!%p1810_p0)
}
  0x8b   : > { %1608 = dma.hbm_to_vmem [thread:$0]  (!%p2523_p4), %s2471_s8, 16, %s358_s1, [#allocation13]  }
  0x8c   : > { %s2232_s3 = scalar_lea.hbm %s2463_s0, %s2139_s29  ;;  %s378_s14 = scalar_lea.vmem [#allocation3], %s2143_s11 }
  0x8d   : > { %s385_s28 = sshll.u32 %s378_s14, 4  ;;  %s2241_s30 = scalar_lea.hbm %s2465_s2, %s2139_s29  ;;  %s2235_s28 = int_to_ptr.vmem [resolvable:$true] %s385_s28 }
  0x8e   : > { %s2526_s22 = sand.u32 1, %s1948_s19   ;;  %s1814_s17 = scalar_lea.hbm %s2232_s3, 128 }
  0x8f   : > { %s375_s1 = scalar_lea.sflag [#allocation4], %s2526_s22  ;;  %p1815_p0 = scmp.ne.s32.totalorder %s2232_s3, %s1814_s17 }
  0x90   : > { %p2527_p8 = scmp.ne.s32.totalorder %s2521_s16, 0  ;;  %s1819_s10 = scalar_lea.hbm %s2463_s0, 256 }
  0x91   : > { %p1820_p9 = scmp.lt.u32.totalorder %s2232_s3, %s2463_s0  ;;  %p1821_p13 = scmp.lt.u32.totalorder %s1819_s10, %s1814_s17 }
  0x92   : > { %p1817_p4 = pnand %p1815_p0, %p2527_p8  ;;  %p1823_p2 = scmp.lt.u32.totalorder %s1814_s17, %s2232_s3 }
  0x93   : > { %p1822_p7 = por %p1821_p13, %p1820_p9 }
  0x94   : > { %p1818_p11 = pneg %p1817_p4 }
  0x95   : > { %p1824_p3 = por %p1823_p2, %p1822_p7 }
  0x97   : > { %p1825_p5 = pnand %p1824_p3, %p1818_p11 }
  0x99   : > { %1828 = shalt.err (!%p1825_p5)
}
  0x9a   : > { %s1829_s29 = scalar_lea.vmem %s2235_s28, 128  ;;  %s1960_s9 = smov [#allocation3]  }
  0x9b   : > { %p1830_p12 = scmp.ne.s32.totalorder %s2235_s28, %s1829_s29  ;;  %s1834_s14 = sshll.u32 %s1960_s9, 4  ;;  %s1835_s14 = int_to_ptr.vmem [resolvable:$false] %s1834_s14 }
  0x9c   : > { %s1836_s12 = scalar_lea.vmem %s1835_s14, 256  ;;  %p1837_p10 = scmp.lt.s32.totalorder %s2235_s28, %s1835_s14 }
  0x9d   : > { %p1832_p1 = pnand %p1830_p12, %p2527_p8  ;;  %p1838_p0 = scmp.lt.s32.totalorder %s1836_s12, %s1829_s29 }
  0x9f   : > { %p1833_p6 = pneg %p1832_p1  ;;  %p1839_p4 = por %p1838_p0, %p1837_p10 }
  0xa1   : > { %p1840_p9 = pnand %p1839_p4, %p1833_p6 }
  0xa3   : > { %1843 = shalt.err (!%p1840_p9)
}
  0xa4   : > { %p2528_p11 = scmp.ne.s32.totalorder %s2519_s27, 0  ;;  %s414_s24 = scalar_lea.vmem [#allocation8], %s2143_s11 }
  0xa5   : > { %s421_s22 = sshll.u32 %s414_s24, 4  ;;  %s1844_s17 = scalar_lea.hbm %s2241_s30, 128  ;;  %s422_s22 = int_to_ptr.vmem [resolvable:$true] %s421_s22 }
  0xa6   : > { %1612 = dma.hbm_to_vmem [thread:$0]  (!%p2528_p11), %s2232_s3, 128, %s2235_s28, %s375_s1  }
  0xa7   : > { %p1845_p13 = scmp.ne.s32.totalorder %s2241_s30, %s1844_s17  ;;  %s1849_s10 = scalar_lea.hbm %s2465_s2, 256 }
  0xa8   : > { %p1850_p3 = scmp.lt.u32.totalorder %s2241_s30, %s2465_s2  ;;  %p1851_p5 = scmp.lt.u32.totalorder %s1849_s10, %s1844_s17 }
  0xa9   : > { %p1847_p7 = pnand %p1845_p13, %p2527_p8  ;;  %p1853_p1 = scmp.lt.u32.totalorder %s1844_s17, %s2241_s30 }
  0xaa   : > { %p1852_p12 = por %p1851_p5, %p1850_p3 }
  0xab   : > { %p1848_p2 = pneg %p1847_p7 }
  0xac   : > { %p1854_p6 = por %p1853_p1, %p1852_p12 }
  0xae   : > { %p1855_p10 = pnand %p1854_p6, %p1848_p2 }
  0xb0   : > { %1858 = shalt.err (!%p1855_p10)
}
  0xb1   : > { %s1859_s11 = scalar_lea.vmem %s422_s22, 128  ;;  %s1961_s3 = smov [#allocation8]  }
  0xb2   : > { %p1860_p0 = scmp.ne.s32.totalorder %s422_s22, %s1859_s11  ;;  %s1864_s28 = sshll.u32 %s1961_s3, 4  ;;  %s1865_s28 = int_to_ptr.vmem [resolvable:$false] %s1864_s28 }
  0xb3   : > { %s1866_s1 = scalar_lea.vmem %s1865_s28, 256  ;;  %p1867_p13 = scmp.lt.s32.totalorder %s422_s22, %s1865_s28 }
  0xb4   : > { %p1862_p4 = pnand %p1860_p0, %p2527_p8  ;;  %p1868_p7 = scmp.lt.s32.totalorder %s1866_s1, %s1859_s11 }
  0xb6   : > { %p1863_p9 = pneg %p1862_p4  ;;  %p1869_p11 = por %p1868_p7, %p1867_p13 }
  0xb8   : > { %p1870_p3 = pnand %p1869_p11, %p1863_p9 }
  0xba   : > { %1873 = shalt.err (!%p1870_p3)
}
  0xbb   : > { %p2529_p5 = scmp.ne.s32.totalorder %s2519_s27, 0  ;;  %p2530_p2 = scmp.ne.s32.totalorder %s2510_s25, 0 }
  0xbc   : > { %s2288_s16 = sand.u32 (!%p2530_p2), 1, %s1944_s18   ;;  %p2531_p8 = scmp.ne.s32.totalorder (!%p2530_p2), %s2507_s23, 0 }
  0xbd   : > { %1618 = dma.hbm_to_vmem [thread:$0]  (!%p2529_p5), %s2241_s30, 128, %s422_s22, %s2159_s13  }
  0xbe   : > { %430 = sbr.rel (%p2530_p2) target bundleno = 1666 (0x682), region = 64  ;;  %s2291_s29 = sshll.u32 (!%p2530_p2), %s2288_s16, 3 }
  0xbf   : > { %s433_s9 = scalar_lea.sflag (!%p2530_p2), [#allocation4], %s2288_s16  ;;  %s436_s14 = scalar_lea.vmem (!%p2530_p2), [#allocation3], %s2291_s29 }
  0xc5   : > { %1919 = dma.done.wait (%p2531_p8), %s433_s9, 128  }
  0xc6   : > { %1921 = vsyncadd (%p2531_p8), %s433_s9, 4294967168  ;;  %s441_s25 = sand.u32 1, %s2052_s21   ;;  %s445_s27 = scalar_lea.vmem [#allocation6], %s2291_s29 }
  0xc7   : > { %s442_s13 = scalar_lea.sflag [#allocation7], %s441_s25 }
  0xc8   : > { %1923 = dma.done.wait (%p2531_p8), %s442_s13, 256  }
  0xc9   : > { %1925 = vsyncadd (%p2531_p8), %s442_s13, 4294967040  ;;  %s454_s30 = scalar_lea.vmem [#allocation8], %s2291_s29  ;;  %p2532_p11 = scmp.eq.s32.totalorder %s2052_s21, 0 }
  0xcb   : > { %1927 = dma.done.wait (%p2532_p11), [#allocation10], 512   ;;  %p2533_p12 = pmov %p2532_p11 }
  0xcc   : > { %p2534_p1 = pmov %p2532_p11 }
  0xcd   : > { %1929 = vsyncadd (%p2533_p12), [#allocation10], 4294966784 }
  0xce   : > { %1931 = dma.done.wait (%p2534_p1), [#allocation13], 16   ;;  %p2535_p6 = pmov %p2534_p1 }
  0xcf   : > { %v1962_v0 = vmov 0.0   ;;  %vm1963_vm0 = vmmov 0   ;;  %v1676_v1 = vld [vmem:[%s2468_s5] sm:$0xff]   ;;  %v1677_v2 = vld [vmem:[#allocation9] sm:$0xff]   ;;  %v1678_v3 = vld [vmem:[%s2468_s5 + $0x8] sm:$0xff]   ;;  %vm545_vm1 = vcmask 261120  }
  0xd0   : > { %1933 = vsyncadd (%p2535_p6), [#allocation13], 4294967280  ;;  %1507 = vmatprep.subr.bf16.mxu1 %v1962_v0  ;;  %1499 = vmatprep.subr.bf16.mxu0 %v1962_v0  ;;  %v518_v4 = vld [vmem:[%s445_s27] sm:$0xff]  ;;  %v516_v6 = vld [vmem:[%s436_s14] sm:$0xff]  ;;  %s2536_s15 = sld [smem:[#allocation28_spill]]  ;;  %vm724_vm2 = vcmask 64512  }
  0xd1   : > { %1511 = vmatprep.mubr.msk.bf16.mxu1 %vm1963_vm0, %v1962_v0  ;;  %1503 = vmatprep.mubr.msk.bf16.mxu0 %vm1963_vm0, %v1962_v0  ;;  %v1679_v5 = vld [vmem:[#allocation9 + $0x8] sm:$0xff]   ;;  %v519_v7 = vpack.c.bf16 %v518_v4, %v518_v4  ;;  %v517_v8 = vpack.c.bf16 %v516_v6, %v516_v6  ;;  %s1964_s26 = smov 112   ;;  %s1965_s11 = smov 120   ;;  %v1680_v24 = vld [vmem:[#allocation11] sm:$0xff]   ;;  %v1681_v25 = vld [vmem:[#allocation11 + $0x8] sm:$0xff]   ;;  %vm786_vm3 = vcmask 1043456  }
  0xd2   : > { %1508 = vmatpush3.bf16.msra.mxu1 %v1676_v1  ;;  %1500 = vmatpush3.bf16.msra.mxu0 %v1677_v2  ;;  %v1441_v9 = vld [vmem:[%s2469_s6] ss:$0 sm:$0xff]  ;;  %s1966_s3 = smov 104   ;;  %v520_v26 = vld [vmem:[%s454_s30] sm:$0xff]  ;;  %v1445_v42 = vld [vmem:[#allocation12] ss:$0 sm:$0xff] }
  0xd3   : > { %1509 = vmatprep.subr.bf16.mxu1 %v1962_v0  ;;  %1501 = vmatprep.subr.bf16.mxu0 %v1962_v0  ;;  %v521_v27 = vpack.c.bf16 %v520_v26, %v520_v26  ;;  %vm831_vm4 = vcmask 60416   ;;  %s1967_s28 = smov 8   ;;  %s2537_s14 = sld [smem:[#allocation29_spill]]  ;;  %vm953_vm5 = vcmask 126016   ;;  %vm1072_vm6 = vcmask 191616  }
  0xd4   : > { %s1968_s27 = smov 16   ;;  %s1969_s30 = smov 24   ;;  %vm1191_vm7 = vcmask 257216  }
  0xd5   : > { %s2538_s24 = sld [smem:[#allocation30_spill]]  ;;  %s2539_s22 = sld [smem:[#allocation25_spill]] }
  0xd6   : > { %1510 = vmatpush3.bf16.msra.mxu1 %v1678_v3  ;;  %1502 = vmatpush3.bf16.msra.mxu0 %v1679_v5  ;;  %v1437_v10 = vld [vmem:[%s2536_s15] ss:$0 sm:$0xff]  ;;  %s1465_s17 = sshll.u32 %s2052_s21, 7  ;;  %s514_s4 = scalar_lea.vmem [#allocation14], %s2291_s29 }
  0xd7   : > { %1523 = vmatprep.subr.bf16.mxu1 %v1962_v0  ;;  %1515 = vmatprep.subr.bf16.mxu0 %v1962_v0  ;;  %s1275_s20 = sshll.u32 %s514_s4, 4  ;;  %s1970_s29 = smov [#allocation14]   ;;  %s2421_s20 = int_to_ptr.vmem [resolvable:$true] %s1275_s20 }
  0xd8   : > { %s1874_s21 = scalar_lea.vmem %s2421_s20, 128 }
  0xd9   : > { %1512 = vmatmul.mubr.msk.bf16.vlgmr.msra.gmra.mrb[0].mxu1 %vm545_vm1, %v519_v7  ;;  %1504 = vmatmul.mubr.msk.bf16.vlgmr.msra.gmra.mrb[0].mxu0 %vm545_vm1, %v517_v8  ;;  %p1875_p10 = scmp.ne.s32.totalorder %s2421_s20, %s1874_s21 }
  0xda   : > { %1525 = vmatprep.mubr.msk.bf16.mxu1 %vm1963_vm0, %v1962_v0  ;;  %1519 = vmatprep.mubr.msk.bf16.mxu0 %vm1963_vm0, %v1962_v0 }
  0xdb   : > { %1516 = vmatpush3.bf16.msra.mxu0 %v1680_v24  ;;  %p2541_p0 = scmp.ne.s32.totalorder %s2539_s22, 0 }
  0xdc   : > { %1517 = vmatprep.subr.bf16.mxu0 %v1962_v0 }
  0xdd   : > { %p1876_p4 = pnand %p1875_p10, %p2541_p0 }
  0xdf   : > { %1518 = vmatpush3.bf16.msra.mxu0 %v1681_v25  ;;  %p1877_p9 = pneg %p1876_p4 }
  0xe0   : > { %1529 = vmatprep.subr.bf16.mxu0 %v1962_v0 }
  0xe2   : > { %1520 = vmatmul.mubr.msk.bf16.vlgmr.msra.gmra.mrb[4].mxu0 %vm545_vm1, %v521_v27 }
  0xe3   : > { %1531 = vmatprep.mubr.msk.bf16.mxu0 %vm1963_vm0, %v1962_v0 }
 0x1ac   : > { %v650_v11 = vpop.f32.mrb[0].mxu1  ;;  %v583_v14 = vpop.f32.mrb[0].mxu0 }
 0x1ad   : > { %v651_v12 = vadd.f32 %v1441_v9, %v650_v11  ;;  %v1513_v13 = vpop.f32.mrb[1].mxu1  ;;  %v584_v16 = vadd.f32 %v1437_v10, %v583_v14  ;;  %v1505_v17 = vpop.f32.mrb[1].mxu0 }
 0x1ae   : > { %v653_v15 = vpop.f32.mrb[2].mxu1  ;;  %v586_v20 = vpop.f32.mrb[2].mxu0 }
 0x1af   : > { %v656_v18 = vpack.c.bf16 %v651_v12, %v651_v12  ;;  %v1514_v19 = vpop.f32.mrb[3].mxu1  ;;  %v1506_v21 = vpop.f32.mrb[3].mxu0  ;;  %v589_v22 = vpack.c.bf16 %v584_v16, %v584_v16 }
 0x1b1   : > { %957 = vrot.lane.b32.xlu1 %v656_v18, %s1964_s26  ;;  %837 = vrot.lane.b32.xlu0 %v656_v18, %s1965_s11  ;;  %v729_v23 = vsel %vm724_vm2, %v656_v18, 0 }
 0x1b2   : > { %1524 = vmatpush3.bf16.xpose.msra.mxu1 %v729_v23 }
 0x1b3   : > { %1535 = vmatprep.subr.bf16.mxu1 %v1962_v0 }
 0x1b5   : > { %955 = vrot.lane.b32.xlu1 %v589_v22, %s1964_s26  ;;  %834 = vrot.lane.b32.xlu0 %v589_v22, %s1965_s11  ;;  %v717_v43 = vpop.f32.mrb[4].mxu0 }
 0x1b6   : > { %v718_v44 = vadd.f32 %v1445_v42, %v717_v43  ;;  %v1521_v45 = vpop.f32.mrb[5].mxu0 }
 0x1b7   : > { %v720_v46 = vpop.f32.mrb[6].mxu0 }
 0x1b8   : > { %v723_v47 = vpack.c.bf16 %v718_v44, %v718_v44  ;;  %v1522_v48 = vpop.f32.mrb[7].mxu0 }
 0x1b9   : > { %1074 = vrot.lane.b32.xlu1 %v589_v22, %s1966_s3  ;;  %1076 = vrot.lane.b32.xlu0 %v656_v18, %s1966_s3 }
 0x1ba   : > { %1526 = vmatmul.mubr.msk.bf16.vlgmr.msra.gmra.mrb[4].mxu1 %vm724_vm2, %v589_v22  ;;  %v788_v49 = vsel %vm786_vm3, %v723_v47, 0 }
 0x1bb   : > { %1537 = vmatprep.mubr.msk.bf16.mxu1 %vm1963_vm0, %v1962_v0  ;;  %1530 = vmatpush3.bf16.msra.mxu0 %v788_v49 }
 0x1bc   : > { %1541 = vmatprep.subr.bf16.mxu0 %v1962_v0 }
 0x223   : > { %v838_v28 = vpop.permute.xlu0 %837  ;;  %v958_v30 = vpop.permute.xlu1 %957 }
 0x224   : > { %v843_v29 = vsel %vm724_vm2, %v838_v28, 0  ;;  %v963_v32 = vsel %vm724_vm2, %v958_v30, 0 }
 0x225   : > { %1536 = vmatpush3.bf16.xpose.msra.mxu1 %v843_v29 }
 0x226   : > { %1547 = vmatprep.subr.bf16.mxu1 %v1962_v0 }
 0x227   : > { %v835_v31 = vpop.permute.xlu0 %834  ;;  %v956_v34 = vpop.permute.xlu1 %955 }
 0x22b   : > { %v1077_v33 = vpop.permute.xlu0 %1076  ;;  %v1075_v36 = vpop.permute.xlu1 %1074 }
 0x22c   : > { %1538 = vmatmul.mubr.msk.bf16.vlgmr.msra.gmra.mrb[8].mxu1 %vm724_vm2, %v835_v31  ;;  %v1082_v35 = vsel %vm724_vm2, %v1077_v33, 0 }
 0x22d   : > { %1548 = vmatpush3.bf16.xpose.msra.mxu1 %v963_v32  ;;  %1549 = vmatprep.mubr.msk.bf16.mxu1 %vm1963_vm0, %v1962_v0 }
 0x22e   : > { %1559 = vmatprep.subr.bf16.mxu1 %v1962_v0 }
 0x234   : > { %1550 = vmatmul.mubr.msk.bf16.vlgmr.msra.gmra.mrb[12].mxu1 %vm724_vm2, %v956_v34 }
 0x235   : > { %1560 = vmatpush3.bf16.xpose.msra.mxu1 %v1082_v35  ;;  %1561 = vmatprep.mubr.msk.bf16.mxu1 %vm1963_vm0, %v1962_v0 }
 0x236   : > { %1571 = vmatprep.subr.bf16.mxu1 %v1962_v0 }
 0x23c   : > { %1562 = vmatmul.mubr.msk.bf16.vlgmr.msra.gmra.mrb[16].mxu1 %vm724_vm2, %v1075_v36 }
 0x23d   : > { %1575 = vmatprep.mubr.msk.bf16.mxu1 %vm1963_vm0, %v1962_v0 }
 0x28d   : > { %v765_v37 = vpop.f32.mrb[4].mxu1 }
 0x28e   : > { %v1527_v38 = vpop.f32.mrb[5].mxu1  ;;  %v771_v39 = vsel %vm724_vm2, %v765_v37, -inf }
 0x28f   : > { %772 = vmax.xlane.f32.xlu0 %v771_v39  ;;  %v768_v40 = vpop.f32.mrb[6].mxu1 }
 0x290   : > { %v1528_v41 = vpop.f32.mrb[7].mxu1 }
 0x2ff   : > { %v879_v50 = vpop.f32.mrb[8].mxu1 }
 0x300   : > { %v1539_v51 = vpop.f32.mrb[9].mxu1  ;;  %v885_v52 = vsel %vm724_vm2, %v879_v50, -inf }
 0x301   : > { %886 = vmax.xlane.f32.xlu1 %v885_v52  ;;  %v882_v53 = vpop.f32.mrb[10].mxu1 }
 0x302   : > { %v1540_v54 = vpop.f32.mrb[11].mxu1 }
 0x303   : > { %v1682_v54 = vld [vmem:[%s2537_s14] sm:$0xff]  }
 0x304   : > { %1572 = vmatpush3.bf16.msra.mxu1 %v1682_v54 }
 0x305   : > { %1573 = vmatprep.subr.bf16.mxu1 %v1962_v0 }
 0x307   : > { %v999_v55 = vpop.f32.mrb[12].mxu1 }
 0x308   : > { %v1551_v56 = vpop.f32.mrb[13].mxu1  ;;  %v1005_v57 = vsel %vm724_vm2, %v999_v55, -inf }
 0x309   : > { %1006 = vmax.xlane.f32.xlu0 %v1005_v57  ;;  %v1002_v58 = vpop.f32.mrb[14].mxu1  ;;  %v1683_v56 = vld [vmem:[%s2537_s14 + $0x8] sm:$0xff]  }
 0x30a   : > { %v1552_v59 = vpop.f32.mrb[15].mxu1  ;;  %1574 = vmatpush3.bf16.msra.mxu1 %v1683_v56 }
 0x30f   : > { %v1118_v60 = vpop.f32.mrb[16].mxu1 }
 0x310   : > { %v1563_v61 = vpop.f32.mrb[17].mxu1  ;;  %v1124_v62 = vsel %vm724_vm2, %v1118_v60, -inf }
 0x311   : > { %1125 = vmax.xlane.f32.xlu0 %v1124_v62  ;;  %v1121_v63 = vpop.f32.mrb[18].mxu1 }
 0x312   : > { %v1564_v1 = vpop.f32.mrb[19].mxu1 }
 0x31c   : > { %v773_v2 = vpop.xlane.xlu0 %772 }
 0x31d   : > { %v774_v3 = vsub.f32 %v765_v37, %v773_v2 }
 0x31f   : > { %v775_v4 = vmul.f32 1.442695, %v774_v3 }
 0x321   : > { %1684 = vpow2.f32 %v775_v4 }
 0x32b   : > { %v1685_v5 = vpop.eup %1684 }
 0x32c   : > { %v777_v6 = vsel %vm724_vm2, %v1685_v5, 0.0 }
 0x32d   : > { %778 = vadd.xlane.f32.xlu1 %v777_v6  ;;  %v1460_v6 = vld [vmem:[%s2538_s24] ss:$0 sm:$0xff] }
 0x33e   : > { %898 = vrot.lane.b32.xlu1 %v723_v47, %s1965_s11 }
 0x38e   : > { %v887_v7 = vpop.xlane.xlu1 %886 }
 0x38f   : > { %v888_v8 = vsub.f32 %v879_v50, %v887_v7 }
 0x391   : > { %v889_v9 = vmul.f32 1.442695, %v888_v8 }
 0x393   : > { %1686 = vpow2.f32 %v889_v9 }
 0x396   : > { %v1007_v10 = vpop.xlane.xlu0 %1006 }
 0x397   : > { %v1008_v11 = vsub.f32 %v999_v55, %v1007_v10 }
 0x399   : > { %v1009_v12 = vmul.f32 1.442695, %v1008_v11 }
 0x39b   : > { %1688 = vpow2.f32 %v1009_v12 }
 0x39d   : > { %v1687_v13 = vpop.eup %1686 }
 0x39e   : > { %v1126_v14 = vpop.xlane.xlu0 %1125  ;;  %v891_v15 = vsel %vm724_vm2, %v1687_v13, 0.0 }
 0x39f   : > { %v1127_v16 = vsub.f32 %v1118_v60, %v1126_v14  ;;  %892 = vadd.xlane.f32.xlu0 %v891_v15 }
 0x3a1   : > { %v1128_v17 = vmul.f32 1.442695, %v1127_v16 }
 0x3a3   : > { %1690 = vpow2.f32 %v1128_v17 }
 0x3a5   : > { %v1689_v18 = vpop.eup %1688 }
 0x3a6   : > { %v1011_v19 = vsel %vm724_vm2, %v1689_v18, 0.0 }
 0x3a7   : > { %1012 = vadd.xlane.f32.xlu1 %v1011_v19 }
 0x3ad   : > { %v1691_v20 = vpop.eup %1690 }
 0x3ae   : > { %v1130_v21 = vsel %vm724_vm2, %v1691_v20, 0.0 }
 0x3af   : > { %1131 = vadd.xlane.f32.xlu0 %v1130_v21 }
 0x3b8   : > { %1136 = vrot.lane.b32.xlu1 %v723_v47, %s1966_s3  ;;  %s1262_s3 = scalar_lea.sflag [#allocation5], %s2288_s16 }
 0x3ba   : > { %v779_v22 = vpop.xlane.xlu1 %778 }
 0x3bb   : > { %1692 = vrcp.f32 %v779_v22 }
 0x3be   : > { %v899_v24 = vpop.permute.xlu1 %898 }
 0x3bf   : > { %v904_v27 = vsel %vm786_vm3, %v899_v24, 0 }
 0x3c5   : > { %v1693_v23 = vpop.eup %1692  ;;  %1017 = vrot.lane.b32.xlu0 %v723_v47, %s1964_s26  ;;  %s2540_s26 = sld [smem:[#allocation31_spill]] }
 0x3c6   : > { %v781_v25 = vmul.f32 %v1693_v23, %v1685_v5 }
 0x3c8   : > { %v782_v26 = vpack.c.bf16 %v781_v25, %v781_v25 }
 0x3ca   : > { %1532 = vmatmul.mubr.msk.bf16.vlgmr.msra.gmra.mrb[8].mxu0 %vm724_vm2, %v782_v26 }
 0x3cb   : > { %1542 = vmatpush3.bf16.msra.mxu0 %v904_v27  ;;  %1543 = vmatprep.mubr.msk.bf16.mxu0 %vm1963_vm0, %v1962_v0  ;;  %s2419_s11 = scalar_lea.hbm %s2540_s26, %s1465_s17 }
 0x3cc   : > { %1553 = vmatprep.subr.bf16.mxu0 %v1962_v0 }
 0x42c   : > { %v893_v28 = vpop.xlane.xlu0 %892 }
 0x42d   : > { %1694 = vrcp.f32 %v893_v28 }
 0x434   : > { %v1013_v29 = vpop.xlane.xlu1 %1012 }
 0x435   : > { %1696 = vrcp.f32 %v1013_v29 }
 0x437   : > { %v1695_v30 = vpop.eup %1694 }
 0x438   : > { %v895_v31 = vmul.f32 %v1695_v30, %v1687_v13  ;;  %v1137_v38 = vpop.permute.xlu1 %1136 }
 0x439   : > { %v1142_v40 = vsel %vm786_vm3, %v1137_v38, 0 }
 0x43a   : > { %v896_v32 = vpack.c.bf16 %v895_v31, %v895_v31 }
 0x43c   : > { %v1132_v33 = vpop.xlane.xlu0 %1131  ;;  %1544 = vmatmul.mubr.msk.bf16.vlgmr.msra.gmra.mrb[12].mxu0 %vm724_vm2, %v896_v32 }
 0x43d   : > { %1698 = vrcp.f32 %v1132_v33  ;;  %1555 = vmatprep.mubr.msk.bf16.mxu0 %vm1963_vm0, %v1962_v0 }
 0x43f   : > { %v1697_v34 = vpop.eup %1696 }
 0x440   : > { %v1015_v35 = vmul.f32 %v1697_v34, %v1689_v18  ;;  %v1018_v36 = vpop.permute.xlu0 %1017 }
 0x441   : > { %v1023_v37 = vsel %vm786_vm3, %v1018_v36, 0 }
 0x442   : > { %1554 = vmatpush3.bf16.msra.mxu0 %v1023_v37  ;;  %v1016_v39 = vpack.c.bf16 %v1015_v35, %v1015_v35 }
 0x443   : > { %1565 = vmatprep.subr.bf16.mxu0 %v1962_v0 }
 0x445   : > { %1556 = vmatmul.mubr.msk.bf16.vlgmr.msra.gmra.mrb[16].mxu0 %vm724_vm2, %v1016_v39 }
 0x446   : > { %1566 = vmatpush3.bf16.msra.mxu0 %v1142_v40  ;;  %1567 = vmatprep.mubr.msk.bf16.mxu0 %vm1963_vm0, %v1962_v0 }
 0x447   : > { %v1699_v41 = vpop.eup %1698 }
 0x448   : > { %v1134_v42 = vmul.f32 %v1699_v41, %v1691_v20 }
 0x44a   : > { %v1135_v43 = vpack.c.bf16 %v1134_v42, %v1134_v42 }
 0x44d   : > { %1568 = vmatmul.mubr.msk.bf16.vlgmr.msra.gmra.mrb[20].mxu0 %vm724_vm2, %v1135_v43 }
 0x49d   : > { %v824_v44 = vpop.f32.mrb[8].mxu0 }
 0x49e   : > { %v830_v45 = vpack.c.bf16 %v824_v44, %v824_v44  ;;  %v1533_v46 = vpop.f32.mrb[9].mxu0 }
 0x49f   : > { %v827_v47 = vpop.f32.mrb[10].mxu0 }
 0x4a0   : > { %832 = vst.msk [vmem:[#allocation2] sm:$0xf] %vm831_vm4, %v830_v45  ;;  %v1534_v48 = vpop.f32.mrb[11].mxu0 }
 0x50f   : > { %v940_v49 = vpop.f32.mrb[12].mxu0 }
 0x510   : > { %v1468_v50 = vpack.c.bf16 %v940_v49, %v940_v49  ;;  %v1545_v51 = vpop.f32.mrb[13].mxu0 }
 0x511   : > { %v943_v52 = vpop.f32.mrb[14].mxu0 }
 0x512   : > { %950 = vrot.lane.b32.xlu1 %v1468_v50, %s1967_s28  ;;  %v1546_v53 = vpop.f32.mrb[15].mxu0  ;;  %s1878_s28 = sshll.u32 %s1970_s29, 4  ;;  %s1879_s28 = int_to_ptr.vmem [resolvable:$false] %s1878_s28 }
 0x513   : > { %s1880_s1 = scalar_lea.vmem %s1879_s28, 256  ;;  %p1881_p13 = scmp.lt.s32.totalorder %s2421_s20, %s1879_s28 }
 0x514   : > { %p1882_p7 = scmp.lt.s32.totalorder %s1880_s1, %s1874_s21 }
 0x516   : > { %p1883_p3 = por %p1882_p7, %p1881_p13 }
 0x518   : > { %v1059_v55 = vpop.f32.mrb[16].mxu0  ;;  %p1884_p5 = pnand %p1883_p3, %p1877_p9 }
 0x519   : > { %v1469_v57 = vpack.c.bf16 %v1059_v55, %v1059_v55  ;;  %v1557_v58 = vpop.f32.mrb[17].mxu0 }
 0x51a   : > { %v1062_v59 = vpop.f32.mrb[18].mxu0 }
 0x51b   : > { %1069 = vrot.lane.b32.xlu0 %v1469_v57, %s1968_s27  ;;  %v1558_v60 = vpop.f32.mrb[19].mxu0 }
 0x520   : > { %v1178_v61 = vpop.f32.mrb[20].mxu0 }
 0x521   : > { %v1470_v62 = vpack.c.bf16 %v1178_v61, %v1178_v61  ;;  %v1569_v63 = vpop.f32.mrb[21].mxu0 }
 0x522   : > { %v1181_v1 = vpop.f32.mrb[22].mxu0 }
 0x523   : > { %1188 = vrot.lane.b32.xlu1 %v1470_v62, %s1969_s30  ;;  %v1570_v2 = vpop.f32.mrb[23].mxu0 }
 0x584   : > { %v951_v3 = vpop.permute.xlu1 %950 }
 0x585   : > { %954 = vst.msk [vmem:[#allocation2] sm:$0xf] %vm953_vm5, %v951_v3 }
 0x58d   : > { %v1070_v4 = vpop.permute.xlu0 %1069 }
 0x58e   : > { %1073 = vst.msk [vmem:[#allocation2] sm:$0xf] %vm1072_vm6, %v1070_v4 }
 0x595   : > { %v1189_v0 = vpop.permute.xlu1 %1188 }
 0x596   : > { %1192 = vst.msk [vmem:[#allocation2] sm:$0xf] %vm1191_vm7, %v1189_v0 }
 0x59d   : > { %v1193_v5 = vld [vmem:[#allocation2] sm:$0xf] }
 0x59e   : > { %1576 = vmatmul.mubr.msk.bf16.vlgmr.msra.gmra.mrb[20].mxu1 %vm545_vm1, %v1193_v5 }
 0x671   : > { %v1254_v7 = vpop.f32.mrb[20].mxu1 }
 0x672   : > { %v1255_v8 = vadd.f32 %v1460_v6, %v1254_v7  ;;  %v1577_v9 = vpop.f32.mrb[21].mxu1 }
 0x673   : > { %v1257_v10 = vpop.f32.mrb[22].mxu1 }
 0x674   : > { %1260 = vst [vmem:[%s514_s4] sm:$0xff] %v1255_v8  ;;  %v1578_v11 = vpop.f32.mrb[23].mxu1 }
 0x675   : > { %1887 = shalt.err (!%p1884_p5)
}
 0x676   : > { %s1888_s16 = scalar_lea.hbm %s2419_s11, 128  ;;  %s1892_s13 = scalar_lea.hbm %s2540_s26, 256 }
 0x677   : > { %p1889_p2 = scmp.ne.s32.totalorder %s2419_s11, %s1888_s16  ;;  %p1893_p12 = scmp.lt.u32.totalorder %s2419_s11, %s2540_s26 }
 0x678   : > { %p1894_p1 = scmp.lt.u32.totalorder %s1892_s13, %s1888_s16  ;;  %p1896_p10 = scmp.lt.u32.totalorder %s1888_s16, %s2419_s11 }
 0x679   : > { %p1890_p8 = pnand %p1889_p2, %p2541_p0 }
 0x67a   : > { %p1895_p6 = por %p1894_p1, %p1893_p12 }
 0x67b   : > { %p1891_p11 = pneg %p1890_p8 }
 0x67c   : > { %p1897_p4 = por %p1896_p10, %p1895_p6 }
 0x67e   : > { %p1898_p9 = pnand %p1897_p4, %p1891_p11 }
 0x680   : > { %1901 = shalt.err (!%p1898_p9)
}
 0x681   : > { %1597 = dma.vmem_to_hbm [thread:$0]  (%p2541_p0), %s2421_s20, 128, %s2419_s11, %s1262_s3  }
 0x682 PF: > { %s2542_s23 = sld [smem:[#allocation20_spill]]  ;;  %s2543_s12 = sld [smem:[#allocation22_spill]] }
 0x683   : > { %s2544_s24 = sld [smem:[#allocation21_spill]] }
 0x688   : > { %s1287_s17 = sand.u32 1, %s2542_s23   ;;  %p2545_p13 = scmp.ne.s32.totalorder %s2543_s12, 0 }
 0x689   : > { %p2546_p7 = scmp.ge.s32.totalorder %s2544_s24, 2  ;;  %s1288_s4 = scalar_lea.sflag [#allocation5], %s1287_s17 }
 0x68b   : > { %p1620_p3 = pnand %p2546_p7, %p2545_p13 }
 0x68d   : > { %1935 = dma.done.wait (!%p1620_p3), %s1288_s4, 128  }
 0x68e   : > { %1937 = vsyncadd (!%p1620_p3), %s1288_s4, 4294967168  ;;  %s2547_s20 = sld [smem:[#allocation23_spill]]  ;;  %s2548_s10 = sld [smem:[#allocation24_spill]] }
 0x68f   : > { %s2549_s17 = smov %s1944_s18  ;;  %s2550_s18 = smov %s1948_s19 }
 0x694   : > { %p29_p5 = scmp.ge.s32.totalorder %s2547_s20, 4   ;;  %s2551_s19 = smov %s2548_s10 }
 0x696   :  { %31 = sbr.rel (!%p29_p5) target bundleno = 16 (0x10), region = 145 }
 0x69d   :  { %1293 = vsyncpa [#allocation4], 1 }
 0x69e   :  { %1295 = vsyncpa [#allocation4 + $0x1], 1 }
 0x69f   :  { %1296 = vsyncpa [#allocation7], 1 }
 0x6a0   :  { %1298 = vsyncpa [#allocation7 + $0x1], 1 }
 0x6a1   :  { %1299 = vsyncpa [#allocation10], 1 }
 0x6a2   :  { %1300 = vsyncpa [#allocation13], 1 }
 0x6a3   :  { %1301 = vsyncpa [#allocation5], 1 }
 0x6a4   :  { %1303 = vsyncpa [#allocation5 + $0x1], 1 }

</bundles_post_ra>
